<compile_context>
chip_gen: v7x
topology: tpu7x:2x2x1
jax: 0.10.0
libtpu: 0.0.40
codegen_flags: <defaults>
</compile_context>

<pallas_src>
import functools

import jax
import jax.numpy as jnp
from jax import lax
from jax.experimental import pallas as pl
from jax.experimental.pallas import tpu as pltpu


def _proto_loss_kernel(a_ref, p_ref, loss_ref, prec_ref,
                       an_ref, loss_acc, corr_acc, *, total_q):
    q = pl.program_id(0)
    num_q = pl.num_programs(0)

    # ---- once per call: normalize the resident anchor block, zero accumulators.
    @pl.when(q == 0)
    def _():
        a = a_ref[...].astype(jnp.float32)                               # (S, D)
        # F.normalize(x, dim=-1) == x / max(||x||, 1e-12); rsqrt keeps the
        # divide off the VALU (EUP slot is otherwise idle here).
        inv = lax.rsqrt(jnp.maximum(jnp.sum(a * a, axis=-1, keepdims=True), 1e-24))
        an_ref[...] = (a * inv).astype(an_ref.dtype)
        loss_acc[...] = jnp.zeros_like(loss_acc)
        corr_acc[...] = jnp.zeros_like(corr_acc)

    p = p_ref[...]                                                       # (TQ, D) native dtype
    tq = p.shape[0]
    s = an_ref.shape[0]

    # logits = p @ a_n.T on the MXU, contracting last dims of both operands
    # (no transposed copy of the anchor).
    logits = lax.dot_general(
        p, an_ref[...],
        dimension_numbers=(((1,), (1,)), ((), ())),
        preferred_element_type=jnp.float32)                              # (TQ, S) f32

    # labels as a (TQ, 1) column: global row i -> i % S.
    rows = q * tq + lax.broadcasted_iota(jnp.int32, (tq, 1), 0)          # (TQ, 1)
    labels_col = rows % s                                                # (TQ, 1)
    valid = rows < total_q                                               # mask padded rows

    col_ids = lax.broadcasted_iota(jnp.int32, (tq, s), 1)                # (TQ, S)
    label_mask = col_ids == labels_col                                   # broadcast compare

    # Cross entropy (stable logsumexp); accumulate the per-row sum.
    m = jnp.max(logits, axis=-1, keepdims=True)                          # (TQ, 1)
    lse = m + jnp.log(jnp.sum(jnp.exp(logits - m), axis=-1, keepdims=True))
    target = jnp.sum(jnp.where(label_mask, logits, 0.0), axis=-1, keepdims=True)
    loss_rows = jnp.where(valid, lse - target, 0.0)                      # padded rows -> 0
    loss_acc[...] += jnp.sum(loss_rows, keepdims=True)                   # (1, 1)

    # Top-1: first-occurrence argmax (matches torch.topk tie-breaking).
    is_max = logits == m
    argmax_col = jnp.min(jnp.where(is_max, col_ids, s), axis=-1, keepdims=True)
    correct = jnp.where(valid & (argmax_col == labels_col), 1.0, 0.0)
    corr_acc[...] += jnp.sum(correct, keepdims=True)                     # (1, 1)

    # ---- finalize on the last tile.
    @pl.when(q == num_q - 1)
    def _():
        loss_ref[0] = loss_acc[0, 0] / total_q
        prec_ref[0] = corr_acc[0, 0] * (100.0 / total_q)
    # TODO(synk): prec5 (top-5 accuracy) is computed-then-discarded in the
    # reference forward; only prec1 is returned, so it is not implemented here.


def proto_loss(out_anchor, out_positive, *, q_tile=256):
    """out_anchor: (S, D), out_positive: (n_q*S, D). Returns (nloss, prec1)."""
    S, D = out_anchor.shape
    Q, D2 = out_positive.shape
    assert D == D2 and Q % S == 0

    # Q tile: sublane-aligned, full D on the lane axis.
    tq = min(q_tile, Q)
    if tq < Q:
        tq = max(8, (tq // 8) * 8)
    num_tiles = pl.cdiv(Q, tq)

    kernel = functools.partial(_proto_loss_kernel, total_q=Q)

    p_bytes = out_positive.dtype.itemsize
    a_bytes = out_anchor.dtype.itemsize

    loss, prec1 = pl.pallas_call(
        kernel,
        out_shape=(
            jax.ShapeDtypeStruct((1,), jnp.float32),
            jax.ShapeDtypeStruct((1,), jnp.float32),
        ),
        grid_spec=pltpu.PrefetchScalarGridSpec(
            num_scalar_prefetch=0,
            grid=(num_tiles,),
            in_specs=[
                # anchor: resident across all Q tiles
                pl.BlockSpec((S, D), lambda q: (0, 0)),
                # positive: pipelined (double-buffered) over Q tiles
                pl.BlockSpec((tq, D), lambda q: (q, 0)),
            ],
            out_specs=(
                pl.BlockSpec((1,), lambda q: (0,),
                             memory_space=pltpu.MemorySpace.SMEM),
                pl.BlockSpec((1,), lambda q: (0,),
                             memory_space=pltpu.MemorySpace.SMEM),
            ),
            scratch_shapes=[
                pltpu.VMEM((S, D), out_positive.dtype),   # normalized anchor (reused)
                pltpu.VMEM((1, 1), jnp.float32),          # running loss sum
                pltpu.VMEM((1, 1), jnp.float32),          # running correct count
            ],
        ),
        compiler_params=pltpu.CompilerParams(
            # reduction across the Q axis (sequential accumulator) -> arbitrary
            dimension_semantics=("arbitrary",),
            vmem_limit_bytes=32 * 1024 * 1024,            # safe on v5e/v6e/v7x
        ),
        cost_estimate=pl.CostEstimate(
            flops=2 * Q * S * D,
            transcendentals=Q * S,
            bytes_accessed=Q * D * p_bytes + S * D * a_bytes + 2 * 4,
        ),
    )(out_anchor, out_positive)
    return loss[0], prec1[0]


def _reference(out_anchor, out_positive):
    # Plain-JAX reference for sanity checking.
    S = out_anchor.shape[0]
    Q = out_positive.shape[0]
    norm = jnp.sqrt(jnp.sum(out_anchor * out_anchor, axis=-1, keepdims=True))
    a_n = out_anchor / jnp.maximum(norm, 1e-12)
    logits = out_positive @ a_n.T
    labels = jnp.arange(Q, dtype=jnp.int32) % S
    logp = jax.nn.log_softmax(logits, axis=-1)
    loss = -jnp.mean(jnp.take_along_axis(logp, labels[:, None], axis=-1))
    prec1 = jnp.mean((jnp.argmax(logits, axis=-1) == labels).astype(jnp.float32)) * 100.0
    return loss, prec1


if __name__ == "__main__":
    # Small, module-consistent shapes: stepsize S=8 classes, n_q=2 queries/class,
    # embedding dim D=32. q_tile=8 -> a 2-step grid to exercise the pipeline
    # and the cross-tile accumulation.
    S, n_q, D = 8, 2, 32
    Q = n_q * S
    key = jax.random.PRNGKey(0)
    k_a, k_p = jax.random.split(key)
    out_anchor = jax.random.normal(k_a, (S, D), dtype=jnp.float32)
    out_positive = jax.random.normal(k_p, (Q, D), dtype=jnp.float32)

    nloss, prec1 = proto_loss(out_anchor, out_positive, q_tile=8)
    jax.block_until_ready((nloss, prec1))

    ref_loss, ref_prec1 = _reference(out_anchor, out_positive)
    assert jnp.allclose(nloss, ref_loss, atol=1e-5, rtol=1e-5), (nloss, ref_loss)
    assert jnp.allclose(prec1, ref_prec1, atol=1e-4), (prec1, ref_prec1)

    print("KERNEL_OK")
</pallas_src>

<mosaic_0001>
module attributes {stable_mosaic.version = 11 : i64} {
  func.func @_proto_loss_kernel(%arg0: i32, %arg1: memref<8x32xf32, #tpu.memory_space<vmem>>, %arg2: memref<8x32xf32, #tpu.memory_space<vmem>>, %arg3: memref<1xf32, #tpu.memory_space<smem>>, %arg4: memref<1xf32, #tpu.memory_space<smem>>, %arg5: memref<8x32xf32, #tpu.memory_space<vmem>>, %arg6: memref<1x1xf32, #tpu.memory_space<vmem>>, %arg7: memref<1x1xf32, #tpu.memory_space<vmem>>) attributes {dimension_semantics = [#tpu.dimension_semantics<arbitrary>], iteration_bounds = array<i64: 2>, scalar_prefetch = 0 : i64, scratch_operands = 3 : i64, tpu.core_type = #tpu.core_type<tc>, window_params = [{pipeline_mode = #tpu.pipeline_mode<synchronous>, transform_indices = @transform_0, window_bounds = array<i64: 8, 32>}, {transform_indices = @transform_1, window_bounds = array<i64: 8, 32>}, {transform_indices = @transform_2, window_bounds = array<i64: 1>}, {transform_indices = @transform_3, window_bounds = array<i64: 1>}]} {
    %c0_i32 = arith.constant 0 : i32
    %0 = arith.cmpi eq, %arg0, %c0_i32 : i32
    %1 = arith.extui %0 : i1 to i32
    %c0_i32_0 = arith.constant 0 : i32
    %2 = arith.cmpi ne, %1, %c0_i32_0 : i32
    scf.if %2 {
      %c0_30 = arith.constant 0 : index
      %c0_31 = arith.constant 0 : index
      %77 = vector.load %arg1[%c0_30, %c0_31] : memref<8x32xf32, #tpu.memory_space<vmem>>, vector<8x32xf32>
      %78 = arith.mulf %77, %77 : vector<8x32xf32>
      %cst_32 = arith.constant dense<0.000000e+00> : vector<8xf32>
      %79 = vector.multi_reduction <add>, %78, %cst_32 [1] : vector<8x32xf32> to vector<8xf32>
      %80 = vector.shape_cast %79 : vector<8xf32> to vector<8x1xf32>
      %cst_33 = arith.constant 1.000000e-24 : f32
      %81 = vector.broadcast %cst_33 : f32 to vector<8x1xf32>
      %82 = arith.maximumf %80, %81 : vector<8x1xf32>
      %83 = math.rsqrt %82 : vector<8x1xf32>
      %84 = vector.broadcast %83 : vector<8x1xf32> to vector<8x32xf32>
      %85 = arith.mulf %77, %84 : vector<8x32xf32>
      %c0_34 = arith.constant 0 : index
      %c0_35 = arith.constant 0 : index
      %86 = vector.load %arg5[%c0_34, %c0_35] : memref<8x32xf32, #tpu.memory_space<vmem>>, vector<8x32xf32>
      tpu.vector_store %arg5[%c0_34, %c0_35], %85 {strides = array<i32>} : memref<8x32xf32, #tpu.memory_space<vmem>>, vector<8x32xf32>,
      %cst_36 = arith.constant 0.000000e+00 : f32
      %87 = vector.broadcast %cst_36 : f32 to vector<1x1xf32>
      %c0_37 = arith.constant 0 : index
      %c0_38 = arith.constant 0 : index
      %88 = vector.load %arg6[%c0_37, %c0_38] : memref<1x1xf32, #tpu.memory_space<vmem>>, vector<1x1xf32>
      tpu.vector_store %arg6[%c0_37, %c0_38], %87 {strides = array<i32>} : memref<1x1xf32, #tpu.memory_space<vmem>>, vector<1x1xf32>,
      %cst_39 = arith.constant 0.000000e+00 : f32
      %89 = vector.broadcast %cst_39 : f32 to vector<1x1xf32>
      %c0_40 = arith.constant 0 : index
      %c0_41 = arith.constant 0 : index
      %90 = vector.load %arg7[%c0_40, %c0_41] : memref<1x1xf32, #tpu.memory_space<vmem>>, vector<1x1xf32>
      tpu.vector_store %arg7[%c0_40, %c0_41], %89 {strides = array<i32>} : memref<1x1xf32, #tpu.memory_space<vmem>>, vector<1x1xf32>,
    } else {
    }
    %c0 = arith.constant 0 : index
    %c0_1 = arith.constant 0 : index
    %3 = vector.load %arg2[%c0, %c0_1] : memref<8x32xf32, #tpu.memory_space<vmem>>, vector<8x32xf32>
    %c0_2 = arith.constant 0 : index
    %c0_3 = arith.constant 0 : index
    %4 = vector.load %arg5[%c0_2, %c0_3] : memref<8x32xf32, #tpu.memory_space<vmem>>, vector<8x32xf32>
    %cst = arith.constant dense<0.000000e+00> : vector<8x8xf32>
    %5 = tpu.matmul %3, %4, %cst {dimension_numbers = #tpu.dot_dimension_numbers<[1], [1], [0], [0], [0, 0, 1, 0], [], []>} : vector<8x32xf32>, vector<8x32xf32>, vector<8x8xf32> -> vector<8x8xf32>
    %c8_i32 = arith.constant 8 : i32
    %6 = arith.muli %arg0, %c8_i32 : i32
    %7 = tpu.iota {dimensions = array<i32: 0>} : vector<8x1xi32>
    %8 = vector.broadcast %6 : i32 to vector<8x1xi32>
    %9 = arith.addi %8, %7 : vector<8x1xi32>
    %c8_i32_4 = arith.constant 8 : i32
    %c0_i32_5 = arith.constant 0 : i32
    %10 = arith.cmpi eq, %c8_i32_4, %c0_i32_5 : i32
    %c1_i32 = arith.constant 1 : i32
    %11 = arith.select %10, %c1_i32, %c8_i32_4 : i32
    %12 = vector.broadcast %11 : i32 to vector<8x1xi32>
    %13 = arith.remsi %9, %12 : vector<8x1xi32>
    %c0_i32_6 = arith.constant 0 : i32
    %14 = vector.broadcast %c0_i32_6 : i32 to vector<8x1xi32>
    %15 = arith.cmpi ne, %13, %14 : vector<8x1xi32>
    %c0_i32_7 = arith.constant 0 : i32
    %16 = vector.broadcast %c0_i32_7 : i32 to vector<8x1xi32>
    %17 = arith.cmpi slt, %13, %16 : vector<8x1xi32>
    %c0_i32_8 = arith.constant 0 : i32
    %18 = arith.cmpi slt, %11, %c0_i32_8 : i32
    %19 = vector.broadcast %18 : i1 to vector<8x1xi1>
    %20 = vector.broadcast %19 : vector<8x1xi1> to vector<8x1xi1>
    %21 = arith.xori %17, %20 : vector<8x1xi1>
    %22 = arith.andi %21, %15 : vector<8x1xi1>
    %23 = vector.broadcast %11 : i32 to vector<8x1xi32>
    %24 = arith.addi %13, %23 : vector<8x1xi32>
    %25 = arith.select %22, %24, %13 : vector<8x1xi1>, vector<8x1xi32>
    %c16_i32 = arith.constant 16 : i32
    %26 = vector.broadcast %c16_i32 : i32 to vector<8x1xi32>
    %27 = arith.cmpi slt, %9, %26 : vector<8x1xi32>
    %28 = tpu.iota {dimensions = array<i32: 1>} : vector<8x8xi32>
    %29 = vector.broadcast %25 : vector<8x1xi32> to vector<8x8xi32>
    %30 = arith.cmpi eq, %28, %29 : vector<8x8xi32>
    %cst_9 = arith.constant dense<0xFF800000> : vector<8xf32>
    %31 = vector.multi_reduction <maximumf>, %5, %cst_9 [1] : vector<8x8xf32> to vector<8xf32>
    %32 = vector.shape_cast %31 : vector<8xf32> to vector<8x1xf32>
    %33 = vector.broadcast %32 : vector<8x1xf32> to vector<8x8xf32>
    %34 = arith.subf %5, %33 : vector<8x8xf32>
    %35 = math.exp %34 : vector<8x8xf32>
    %cst_10 = arith.constant dense<0.000000e+00> : vector<8xf32>
    %36 = vector.multi_reduction <add>, %35, %cst_10 [1] : vector<8x8xf32> to vector<8xf32>
    %37 = vector.shape_cast %36 : vector<8xf32> to vector<8x1xf32>
    %38 = math.log %37 : vector<8x1xf32>
    %39 = arith.addf %32, %38 : vector<8x1xf32>
    %cst_11 = arith.constant 0.000000e+00 : f32
    %40 = vector.broadcast %cst_11 : f32 to vector<8x8xf32>
    %41 = arith.select %30, %5, %40 : vector<8x8xi1>, vector<8x8xf32>
    %cst_12 = arith.constant dense<0.000000e+00> : vector<8xf32>
    %42 = vector.multi_reduction <add>, %41, %cst_12 [1] : vector<8x8xf32> to vector<8xf32>
    %43 = vector.shape_cast %42 : vector<8xf32> to vector<8x1xf32>
    %44 = arith.subf %39, %43 : vector<8x1xf32>
    %cst_13 = arith.constant 0.000000e+00 : f32
    %45 = vector.broadcast %cst_13 : f32 to vector<8x1xf32>
    %46 = arith.select %27, %44, %45 : vector<8x1xi1>, vector<8x1xf32>
    %c0_14 = arith.constant 0 : index
    %c0_15 = arith.constant 0 : index
    %47 = vector.load %arg6[%c0_14, %c0_15] : memref<1x1xf32, #tpu.memory_space<vmem>>, vector<1x1xf32>
    %48 = vector.shape_cast %46 : vector<8x1xf32> to vector<1x8x1xf32>
    %cst_16 = arith.constant dense<0.000000e+00> : vector<1xf32>
    %49 = vector.multi_reduction <add>, %48, %cst_16 [1, 2] : vector<1x8x1xf32> to vector<1xf32>
    %50 = vector.shape_cast %49 : vector<1xf32> to vector<1x1x1xf32>
    %51 = vector.extract %50[0, 0, 0] : f32 from vector<1x1x1xf32>
    %52 = vector.broadcast %51 : f32 to vector<1x1xf32>
    %53 = arith.addf %47, %52 : vector<1x1xf32>
    %c0_17 = arith.constant 0 : index
    %c0_18 = arith.constant 0 : index
    %54 = vector.load %arg6[%c0_17, %c0_18] : memref<1x1xf32, #tpu.memory_space<vmem>>, vector<1x1xf32>
    tpu.vector_store %arg6[%c0_17, %c0_18], %53 {strides = array<i32>} : memref<1x1xf32, #tpu.memory_space<vmem>>, vector<1x1xf32>,
    %55 = vector.broadcast %32 : vector<8x1xf32> to vector<8x8xf32>
    %56 = arith.cmpf oeq, %5, %55 : vector<8x8xf32>
    %c8_i32_19 = arith.constant 8 : i32
    %57 = vector.broadcast %c8_i32_19 : i32 to vector<8x8xi32>
    %58 = arith.select %56, %28, %57 : vector<8x8xi1>, vector<8x8xi32>
    %cst_20 = arith.constant dense<2147483647> : vector<8xi32>
    %59 = vector.multi_reduction <minsi>, %58, %cst_20 [1] : vector<8x8xi32> to vector<8xi32>
    %60 = vector.shape_cast %59 : vector<8xi32> to vector<8x1xi32>
    %61 = arith.cmpi eq, %60, %25 : vector<8x1xi32>
    %62 = arith.andi %27, %61 : vector<8x1xi1>
    %cst_21 = arith.constant 1.000000e+00 : f32
    %cst_22 = arith.constant 0.000000e+00 : f32
    %63 = vector.broadcast %cst_21 : f32 to vector<8x1xf32>
    %64 = vector.broadcast %cst_22 : f32 to vector<8x1xf32>
    %65 = arith.select %62, %63, %64 : vector<8x1xi1>, vector<8x1xf32>
    %c0_23 = arith.constant 0 : index
    %c0_24 = arith.constant 0 : index
    %66 = vector.load %arg7[%c0_23, %c0_24] : memref<1x1xf32, #tpu.memory_space<vmem>>, vector<1x1xf32>
    %67 = vector.shape_cast %65 : vector<8x1xf32> to vector<1x8x1xf32>
    %cst_25 = arith.constant dense<0.000000e+00> : vector<1xf32>
    %68 = vector.multi_reduction <add>, %67, %cst_25 [1, 2] : vector<1x8x1xf32> to vector<1xf32>
    %69 = vector.shape_cast %68 : vector<1xf32> to vector<1x1x1xf32>
    %70 = vector.extract %69[0, 0, 0] : f32 from vector<1x1x1xf32>
    %71 = vector.broadcast %70 : f32 to vector<1x1xf32>
    %72 = arith.addf %66, %71 : vector<1x1xf32>
    %c0_26 = arith.constant 0 : index
    %c0_27 = arith.constant 0 : index
    %73 = vector.load %arg7[%c0_26, %c0_27] : memref<1x1xf32, #tpu.memory_space<vmem>>, vector<1x1xf32>
    tpu.vector_store %arg7[%c0_26, %c0_27], %72 {strides = array<i32>} : memref<1x1xf32, #tpu.memory_space<vmem>>, vector<1x1xf32>,
    %c1_i32_28 = arith.constant 1 : i32
    %74 = arith.cmpi eq, %arg0, %c1_i32_28 : i32
    %75 = arith.extui %74 : i1 to i32
    %c0_i32_29 = arith.constant 0 : i32
    %76 = arith.cmpi ne, %75, %c0_i32_29 : i32
    scf.if %76 {
      %c0_30 = arith.constant 0 : index
      %c0_31 = arith.constant 0 : index
      %77 = vector.load %arg6[%c0_30, %c0_31] : memref<1x1xf32, #tpu.memory_space<vmem>>, vector<1x1xf32>
      %78 = vector.extract %77[0, 0] : f32 from vector<1x1xf32>
      %cst_32 = arith.constant 1.600000e+01 : f32
      %79 = arith.divf %78, %cst_32 : f32
      %c0_33 = arith.constant 0 : index
      %80 = memref.load %arg3[%c0_33] : memref<1xf32, #tpu.memory_space<smem>>
      memref.store %79, %arg3[%c0_33] : memref<1xf32, #tpu.memory_space<smem>>
      %c0_34 = arith.constant 0 : index
      %c0_35 = arith.constant 0 : index
      %81 = vector.load %arg7[%c0_34, %c0_35] : memref<1x1xf32, #tpu.memory_space<vmem>>, vector<1x1xf32>
      %82 = vector.extract %81[0, 0] : f32 from vector<1x1xf32>
      %cst_36 = arith.constant 6.250000e+00 : f32
      %83 = arith.mulf %82, %cst_36 : f32
      %c0_37 = arith.constant 0 : index
      %84 = memref.load %arg4[%c0_37] : memref<1xf32, #tpu.memory_space<smem>>
      memref.store %83, %arg4[%c0_37] : memref<1xf32, #tpu.memory_space<smem>>
    } else {
    }
    return
  }
  func.func @transform_0(%arg0: i32) -> (i32, i32) {
    %c0_i32 = arith.constant 0 : i32
    %c0_i32_0 = arith.constant 0 : i32
    %c0_i32_1 = arith.constant 0 : i32
    return %c0_i32, %c0_i32_0 : i32, i32
  }
  func.func @transform_1(%arg0: i32) -> (i32, i32) {
    %c0_i32 = arith.constant 0 : i32
    %c0_i32_0 = arith.constant 0 : i32
    return %arg0, %c0_i32 : i32, i32
  }
  func.func @transform_2(%arg0: i32) -> i32 {
    %c0_i32 = arith.constant 0 : i32
    %c0_i32_0 = arith.constant 0 : i32
    return %c0_i32 : i32
  }
  func.func @transform_3(%arg0: i32) -> i32 {
    %c0_i32 = arith.constant 0 : i32
    %c0_i32_0 = arith.constant 0 : i32
    return %c0_i32 : i32
  }
}

</mosaic_0001>

<bundles_post_ra>
// kernel: tpu_custom_call.1
= control target key start
LH: loop header
LB: loop body
LE: loop exit
PB: predicated region body
PF: predicated region fallthrough
CT: control target
= control target key end

     0   :  { %9 = vsyncpa [#allocation6], 0  ;;  %s941_s0 = inlined_call_operand.hbm [shape: f32[8,32], index: 0, kind: input, shape index: {}]   ;;  %s942_s1 = inlined_call_operand.hbm [shape: f32[16,32], index: 1, kind: input, shape index: {}]   ;;  %s943_s2 = inlined_call_operand.hbm [shape: f32[1], index: 2, kind: output, shape index: {0}]   ;;  %s944_s3 = inlined_call_operand.hbm [shape: f32[1], index: 3, kind: output, shape index: {1}]  }
   0x1   :  { %10 = vsyncpa [#allocation9], 0 }
   0x2   :  { %12 = vsyncpa [#allocation9 + $0x1], 0 }
   0x3   :  { %13 = vsyncpa [#allocation7], 0 }
   0x4   :  { %14 = vsyncpa [#allocation12], 0  ;;  %s742_s12 = smov 0   ;;  %s744_s13 = smov 0  }
   0x5   :  { %s746_s14 = smov 0   ;;  %s748_s15 = smov 0  }
   0x6 LB: > { %s761_s16 = sadd.s32 4294967295, %s713_s15   ;;  %p61_p0 = scmp.ne.s32.totalorder %s705_s13, %s701_s12  ;;  %s713_s15 = sphi %s748_s15, %s963_s15   ;;  %s709_s14 = sphi %s746_s14, %s962_s14   ;;  %s705_s13 = sphi %s744_s13, %s961_s13   ;;  %s701_s12 = sphi %s742_s12, %s960_s12  }
   0x7   : > { %p945_p1 = scmp.eq.s32.totalorder %s761_s16, 0  ;;  %p477_p2 = scmp.ge.s32.totalorder %s713_s15, 1 }
   0x8   : > { %p114_p3 = scmp.lt.s32.totalorder %s713_s15, 3  ;;  %s715_s19 = smov [#allocation5]  }
   0x9   : > { %p770_p5 = por %p945_p1, %p61_p0  ;;  %s127_s20 = sshll.u32 %s715_s19, 4  ;;  %s128_s20 = int_to_ptr.vmem [resolvable:$true] %s127_s20 }
   0xa   : > { %p774_p6 = pnand %p477_p2, %p114_p3  ;;  %s781_s21 = sadd.s32 1, %s713_s15  }
   0xb   : > { %s948_s17 = scalar_select %p770_p5, 1, 0 }
   0xc   : > { %s949_s18 = scalar_select %p774_p6, 1, 0 }
   0xd   : > { %p526_p7 = pneg %p774_p6  ;;  %s45_s23 = ssub.s32 %s713_s15, %s781_s21 }
   0xe   : > { %p791_p9 = scmp.eq.s32.totalorder %s45_s23, 0  ;;  %s48_s25 = sadd.s32 1, %s709_s14 }
   0xf   : > { %p785_p8 = pnand %p526_p7, %p945_p1  ;;  %s585_s28 = scalar_lea.hbm %s941_s0, 128 }
  0x10   : > { %s951_s24 = scalar_select %p791_p9, 1, 0 }
  0x11   : > { %p586_p11 = scmp.ne.s32.totalorder %s941_s0, %s585_s28  ;;  %p587_p12 = pneg %p785_p8 }
  0x12   : > { %p592_p2 = scmp.lt.u32.totalorder %s585_s28, %s941_s0 }
  0x13   : > { %p588_p13 = pnand %p587_p12, %p586_p11 }
  0x15   : > { %p589_p0 = pneg %p588_p13 }
  0x17   : > { %p594_p3 = pnand %p592_p2, %p589_p0 }
  0x19   : > { %597 = shalt.err (!%p594_p3)
}
  0x1a   : > { %s598_s6 = scalar_lea.vmem %s128_s20, 128  ;;  %p606_p10 = scmp.lt.s32.totalorder %s128_s20, %s128_s20 }
  0x1b   : > { %p599_p7 = scmp.ne.s32.totalorder %s128_s20, %s598_s6  ;;  %p607_p5 = scmp.lt.s32.totalorder %s598_s6, %s598_s6 }
  0x1d   : > { %p601_p4 = pnand %p599_p7, %p587_p12  ;;  %p608_p6 = por %p607_p5, %p606_p10 }
  0x1f   : > { %p602_p1 = pneg %p601_p4 }
  0x21   : > { %p609_p9 = pnand %p608_p6, %p602_p1 }
  0x23   : > { %612 = shalt.err (!%p609_p9)
}
  0x24   : > { %529 = dma.hbm_to_vmem [thread:$0]  (!%p785_p8), %s941_s0, 128, %s128_s20, [#allocation6]  }
  0x25   : > { %p952_p4 = scmp.ne.s32.totalorder %s951_s24, 0  ;;  %p56_p5 = scmp.eq.s32.totalorder %s713_s15, 0 }
  0x26   : > { %p535_p1 = scmp.lt.s32.totalorder %s713_s15, 2  ;;  %s138_s10 = sand.u32 1, %s709_s14  }
  0x27   : > { %s817_s9 = scalar_select %p952_p4, %s709_s14, %s48_s25  }
  0x28   : > { %s481_s11 = sshll.u32 %s713_s15, 7  ;;  %p953_p6 = scmp.ne.s32.totalorder %s709_s14, %s705_s13 }
  0x29   : > { %s480_s12 = sshll.u32 %s138_s10, 3  ;;  %s829_s23 = scalar_lea.hbm %s942_s1, %s481_s11 }
  0x2a   : > { %p57_p9 = por %p56_p5, %p953_p6  ;;  %s142_s24 = scalar_lea.vmem [#allocation8], %s480_s12 }
  0x2b   : > { %s149_s15 = sshll.u32 %s142_s24, 4  ;;  %s139_s25 = scalar_lea.sflag [#allocation9], %s138_s10  ;;  %s835_s15 = int_to_ptr.vmem [resolvable:$true] %s149_s15 }
  0x2c   : > { %p831_p8 = pnand %p535_p1, %p57_p9  ;;  %s613_s26 = scalar_lea.hbm %s829_s23, 128 }
  0x2d   : > { %p614_p10 = scmp.ne.s32.totalorder %s829_s23, %s613_s26  ;;  %s618_s29 = scalar_lea.hbm %s942_s1, 256 }
  0x2e   : > { %p615_p11 = pneg %p831_p8  ;;  %p619_p0 = scmp.lt.u32.totalorder %s829_s23, %s942_s1 }
  0x2f   : > { %p620_p2 = scmp.lt.u32.totalorder %s618_s29, %s613_s26  ;;  %p622_p7 = scmp.lt.u32.totalorder %s613_s26, %s829_s23 }
  0x30   : > { %p616_p12 = pnand %p615_p11, %p614_p10 }
  0x31   : > { %p621_p3 = por %p620_p2, %p619_p0 }
  0x32   : > { %p617_p13 = pneg %p616_p12 }
  0x33   : > { %p623_p4 = por %p622_p7, %p621_p3 }
  0x35   : > { %p624_p5 = pnand %p623_p4, %p617_p13 }
  0x37   : > { %627 = shalt.err (!%p624_p5)
}
  0x38   : > { %s628_s5 = scalar_lea.vmem %s835_s15, 128  ;;  %s716_s6 = smov [#allocation8]  }
  0x39   : > { %p629_p1 = scmp.ne.s32.totalorder %s835_s15, %s628_s5  ;;  %s633_s7 = sshll.u32 %s716_s6, 4  ;;  %s634_s7 = int_to_ptr.vmem [resolvable:$false] %s633_s7 }
  0x3a   : > { %s635_s8 = scalar_lea.vmem %s634_s7, 256  ;;  %p636_p10 = scmp.lt.s32.totalorder %s835_s15, %s634_s7 }
  0x3b   : > { %p631_p6 = pnand %p629_p1, %p615_p11  ;;  %p637_p12 = scmp.lt.s32.totalorder %s635_s8, %s628_s5 }
  0x3d   : > { %p632_p9 = pneg %p631_p6  ;;  %p638_p0 = por %p637_p12, %p636_p10 }
  0x3f   : > { %p639_p2 = pnand %p638_p0, %p632_p9 }
  0x41   : > { %642 = shalt.err (!%p639_p2)
}
  0x42   : > { %533 = dma.hbm_to_vmem [thread:$0]  (!%p831_p8), %s829_s23, 128, %s835_s15, %s139_s25  }
  0x43   : > { %p955_p13 = scmp.ne.s32.totalorder %s949_s18, 0 }
  0x44   : > { %p956_p11 = scmp.eq.s32.totalorder (!%p955_p13), %s761_s16, 0 }
  0x45   : > { %158 = sbr.rel (%p955_p13) target bundleno = 1206 (0x4b6), region = 28 }
  0x4c   : > { %684 = dma.done.wait (%p956_p11), [#allocation6], 128   ;;  %p957_p3 = pmov %p956_p11 }
  0x4d   : > { %s164_s10 = sand.u32 1, %s705_s13   ;;  %p958_p7 = scmp.ne.s32.totalorder %s948_s17, 0 }
  0x4e   : > { %686 = vsyncadd (%p957_p3), [#allocation6], 4294967168  ;;  %s869_s11 = sshll.u32 %s164_s10, 3  ;;  %s165_s12 = scalar_lea.sflag [#allocation9], %s164_s10 }
  0x4f   : > { %s168_s19 = scalar_lea.vmem [#allocation8], %s869_s11 }
  0x50   : > { %688 = dma.done.wait (%p958_p7), %s165_s12, 128  }
  0x51   : > { %690 = vsyncadd (%p958_p7), %s165_s12, 4294967168  ;;  %p959_p8 = scmp.ne.s32.totalorder %s761_s16, 0 }
  0x52   : > { %v190_v0 = vld [vmem:[#allocation5] sm:$0xff] (!%p959_p8)  ;;  %vm192_vm0 = vcmask (!%p959_p8), 261120   ;;  %vm200_vm1 = vcmask (!%p959_p8), 0   ;;  %v717_v3 = vmov (!%p959_p8), 0.0  }
  0x53   : > { %189 = sbr.rel (%p959_p8) target bundleno = 244 (0xf4), region = 40  ;;  %v191_v1 = vmul.f32 (!%p959_p8), %v190_v0, %v190_v0  ;;  %201 = vst.msk [vmem:[#allocation3] sm:$0x1] (!%p959_p8), %vm200_vm1, %v717_v3  ;;  %202 = vst.msk [vmem:[#allocation4] sm:$0x1] (!%p959_p8), %vm200_vm1, %v717_v3 }
  0x55   : > { %v193_v2 = vsel (!%p959_p8), %vm192_vm0, %v191_v1, 0.0 }
  0x56   : > { %194 = vadd.xlane.f32.xlu0 (!%p959_p8), %v193_v2 }
  0xe3   : > { %v195_v4 = vpop.xlane.xlu0 %194 }
  0xe4   : > { %v196_v5 = vmax.f32 %v195_v4, 1e-24 }
  0xe6   : > { %579 = vrsqrt.f32 %v196_v5 }
  0xf0   : > { %v580_v6 = vpop.eup %579 }
  0xf1   : > { %v198_v7 = vmul.f32 %v580_v6, %v190_v0 }
  0xf3   : > { %199 = vst.msk [vmem:[#allocation2] sm:$0xff] %vm192_vm0, %v198_v7 }
  0xf4 PF: > { %vm205_vm2 = vcmask 261120   ;;  %v718_v9 = vmov 0.0   ;;  %vm719_vm3 = vmmov 0   ;;  %v203_v10 = vld [vmem:[%s168_s19] sm:$0xff]  ;;  %vm303_vm4 = vcmask 64512   ;;  %s488_s17 = sshll.u32 %s761_s16, 3 }
  0xf5   : > { %499 = vmatprep.subr.mxu0 %v718_v9  ;;  %501 = vmatprep.mubr.msk.f32.mxu0 %vm719_vm3, %v718_v9  ;;  %v283_v14 = vlaneseq  ;;  %v285_v16 = vstv %s488_s17  ;;  %vm323_vm13 = vcmask 7168   ;;  %v322_v63 = vld [vmem:[#allocation3] sm:$0x1]  ;;  %vm336_vm0 = vcmask 0   ;;  %p490_p4 = scmp.ne.s32.totalorder %s761_s16, 1 }
  0xf7   : > { %v284_v15 = vshrl.u32 %v283_v14, 7  ;;  %v301_v25 = vand.u32 127, %v283_v14 }
  0xf9   : > { %v286_v17 = vadd.s32 %v285_v16, %v284_v15 }
  0xfa   : > { %v204_v8 = vld [vmem:[#allocation2] sm:$0xff] }
  0xfb   : > { %500 = vmatpush3.xpose.msk.msra.mxu0 %vm205_vm2, %v204_v8  ;;  %v288_v18 = vsub.s32 0, %v286_v17  ;;  %vm287_vm5 = vcmp.lt.s32.totalorder %v286_v17, 0  ;;  %vm299_vm12 = vcmp.lt.s32.totalorder %v286_v17, 16 }
  0xfd   : > { %v489_v19 = vmin.u32 %v288_v18, %v286_v17 }
  0xfe   : > { %502 = vmatmul.mubr.msk.f32.vlgmr.msra.gmra.mrb[0].mxu0 %vm205_vm2, %v203_v10 }
  0xff   : > { %v291_v20 = vand.u32 7, %v489_v19 }
 0x101   : > { %v292_v21 = vsub.s32 0, %v291_v20 }
 0x103   : > { %v293_v22 = vsel %vm287_vm5, %v292_v21, %v291_v20 }
 0x104   : > { %vm294_vm6 = vcmp.ne.s32.totalorder %v293_v22, 0  ;;  %vm295_vm7 = vcmp.lt.s32.totalorder %v293_v22, 0  ;;  %v297_v23 = vadd.s32 8, %v293_v22 }
 0x105   : > { %vm296_vm8 = vmand %vm295_vm7, %vm294_vm6 }
 0x106   : > { %v298_v28 = vsel %vm296_vm8, %v297_v23, %v293_v22 }
 0x107   : > { %vm302_vm10 = vcmp.eq.s32.totalorder %v301_v25, %v298_v28 }
 0x1d1   : > { %v278_v11 = vpop.f32.mrb[0].mxu0 }
 0x1d2   : > { %v503_v12 = vpop.f32.mrb[1].mxu0  ;;  %v304_v13 = vsel %vm303_vm4, %v278_v11, -inf  ;;  %v316_v33 = vsel %vm302_vm10, %v278_v11, 0.0 }
 0x1d3   : > { %305 = vmax.xlane.f32.xlu0 %v304_v13  ;;  %v317_v34 = vsel %vm303_vm4, %v316_v33, 0.0 }
 0x260   : > { %v306_v24 = vpop.xlane.xlu0 %305 }
 0x261   : > { %v307_v26 = vsub.f32 %v278_v11, %v306_v24  ;;  %vm338_vm9 = vcmp.eq.f32.partialorder %v278_v11, %v306_v24 }
 0x262   : > { %v339_v27 = vsel %vm338_vm9, %v301_v25, 8 }
 0x263   : > { %v308_v29 = vmul.f32 1.442695, %v307_v26  ;;  %v340_v30 = vsel %vm303_vm4, %v339_v27, 2147483647 }
 0x264   : > { %v342_v31 = vshra.s32 %v340_v30, 16  ;;  %v341_v37 = vand.u32 65535, %v340_v30 }
 0x265   : > { %581 = vpow2.f32 %v308_v29 }
 0x266   : > { %v344_v32 = vcvt.s32.f32 %v342_v31  ;;  %v343_v39 = vcvt.s32.f32 %v341_v37 }
 0x268   : > { %345 = vmin.xlane.f32.xlu0 %v344_v32 }
 0x26c   : > { %318 = vadd.xlane.f32.xlu0 %v317_v34 }
 0x26f   : > { %v582_v35 = vpop.eup %581 }
 0x270   : > { %v310_v36 = vsel %vm303_vm4, %v582_v35, 0.0 }
 0x271   : > { %311 = vadd.xlane.f32.xlu1 %v310_v36 }
 0x2f5   : > { %v346_v38 = vpop.xlane.xlu0 %345 }
 0x2f6   : > { %vm347_vm11 = vcmp.eq.f32.partialorder %v344_v32, %v346_v38  ;;  %v352_v49 = vcvt.f32.s32 %v346_v38 }
 0x2f7   : > { %v348_v40 = vsel %vm347_vm11, %v343_v39, inf }
 0x2f8   : > { %349 = vmin.xlane.f32.xlu1 %v348_v40  ;;  %v353_v51 = vshll.u32 %v352_v49, 16 }
 0x2f9   : > { %v319_v45 = vpop.xlane.xlu0 %318 }
 0x2fe   : > { %v312_v41 = vpop.xlane.xlu1 %311 }
 0x2ff   : > { %583 = vlog2.f32 %v312_v41 }
 0x309   : > { %v584_v42 = vpop.eup %583 }
 0x30a   : > { %v314_v43 = vmul.f32 0.6931472, %v584_v42 }
 0x30c   : > { %v315_v44 = vadd.f32 %v314_v43, %v306_v24 }
 0x30e   : > { %v320_v46 = vsub.f32 %v315_v44, %v319_v45 }
 0x310   : > { %v321_v47 = vsel %vm299_vm12, %v320_v46, 0.0 }
 0x311   : > { %v324_v48 = vsel %vm323_vm13, %v321_v47, 0.0 }
 0x312   : > { %325 = vadd.xlane.f32.xlu1 %v324_v48 }
 0x385   : > { %v350_v50 = vpop.xlane.xlu1 %349 }
 0x386   : > { %v351_v52 = vcvt.f32.s32 %v350_v50 }
 0x388   : > { %v354_v53 = vadd.s32 %v353_v51, %v351_v52 }
 0x38a   : > { %vm355_vm14 = vcmp.eq.s32.totalorder %v354_v53, %v298_v28 }
 0x38b   : > { %vm356_vm15 = vmand %vm299_vm12, %vm355_vm14 }
 0x38c   : > { %v357_v54 = vsel %vm356_vm15, 1.0, %v718_v9  ;;  %v358_v9 = vld [vmem:[#allocation4] sm:$0x1] }
 0x38d   : > { %v359_v55 = vsel %vm323_vm13, %v357_v54, 0.0 }
 0x38e   : > { %360 = vadd.xlane.f32.xlu0 %v359_v55 }
 0x39f   : > { %v326_v56 = vpop.xlane.xlu1 %325 }
 0x3a0   : > { %v327_v57 = vrot.slane %v326_v56, 4 }
 0x3a2   : > { %v328_v58 = vadd.f32 %v327_v57, %v326_v56 }
 0x3a4   : > { %v329_v59 = vrot.slane %v328_v58, 2 }
 0x3a6   : > { %v330_v60 = vadd.f32 %v329_v59, %v328_v58 }
 0x3a8   : > { %v331_v61 = vrot.slane %v330_v60, 1 }
 0x3aa   : > { %v332_v62 = vadd.f32 %v331_v61, %v330_v60 }
 0x3ac   : > { %504 = vpush %v332_v62 }
 0x3dd   : > { %s505_s18 = spop %504 }
 0x3de   : > { %v334_v0 = vstv %s505_s18 }
 0x3df   : > { %v335_v1 = vadd.f32 %v334_v0, %v322_v63 }
 0x3e1   : > { %337 = vst.msk [vmem:[#allocation3] sm:$0x1] %vm336_vm0, %v335_v1 }
 0x3e8   : > { %v376_v12 = vld [vmem:[#allocation3] sm:$0x1] (!%p490_p4) }
 0x41b   : > { %v361_v2 = vpop.xlane.xlu0 %360 }
 0x41c   : > { %v362_v3 = vrot.slane %v361_v2, 4 }
 0x41e   : > { %v363_v4 = vadd.f32 %v362_v3, %v361_v2 }
 0x420   : > { %v364_v5 = vrot.slane %v363_v4, 2 }
 0x422   : > { %v365_v6 = vadd.f32 %v364_v5, %v363_v4 }
 0x424   : > { %v366_v7 = vrot.slane %v365_v6, 1 }
 0x426   : > { %v367_v8 = vadd.f32 %v366_v7, %v365_v6 }
 0x428   : > { %506 = vpush %v367_v8 }
 0x429   : > { %508 = vpush (!%p490_p4), %v376_v12 }
 0x457   : > { %375 = sbr.rel (%p490_p4) target bundleno = 1178 (0x49a), region = 44 }
 0x459   : > { %s507_s22 = spop %506 }
 0x45a   : > { %v369_v10 = vstv %s507_s22  ;;  %s509_s23 = spop (!%p490_p4), %508 }
 0x45b   : > { %v370_v11 = vadd.f32 %v369_v10, %v358_v9  ;;  %s380_s20 = smul.f32 (!%p490_p4), 0.0625, %s509_s23 }
 0x45d   : > { %371 = vst.msk [vmem:[#allocation4] sm:$0x1] %vm336_vm0, %v370_v11  ;;  %382 = sst [smem:[#allocation10]] (!%p490_p4), %s380_s20 }
 0x464   : > { %v383_v13 = vld [vmem:[#allocation4] sm:$0x1] }
 0x465   : > { %510 = vpush %v383_v13 }
 0x496   : > { %s511_s24 = spop %510 }
 0x497   : > { %s385_s15 = smul.f32 6.25, %s511_s24 }
 0x499   : > { %387 = sst [smem:[#allocation11]] %s385_s15 }
 0x49a PF: > { %p537_p5 = scmp.eq.s32.totalorder %s761_s16, 1  ;;  %s643_s27 = scalar_lea.hbm %s943_s2, 16 }
 0x49b   : > { %p644_p1 = scmp.ne.s32.totalorder %s943_s2, %s643_s27  ;;  %p649_p10 = scmp.lt.u32.totalorder %s643_s27, %s943_s2 }
 0x49d   : > { %p645_p6 = pnand %p644_p1, %p537_p5 }
 0x49f   : > { %p646_p9 = pneg %p645_p6 }
 0x4a1   : > { %p651_p12 = pnand %p649_p10, %p646_p9 }
 0x4a3   : > { %654 = shalt.err (!%p651_p12)
}
 0x4a4   : > { %s720_s5 = smov [#allocation10]   ;;  %s655_s11 = scalar_lea.hbm %s944_s3, 16 }
 0x4a5   : > { %519 = dma.smem_to_hbm (%p537_p5), %s720_s5, 16, %s943_s2, [#allocation7]  }
 0x4a6   : > { %p656_p0 = scmp.ne.s32.totalorder %s944_s3, %s655_s11  ;;  %p661_p11 = scmp.lt.u32.totalorder %s655_s11, %s944_s3 }
 0x4a8   : > { %p657_p2 = pnand %p656_p0, %p537_p5 }
 0x4aa   : > { %p658_p13 = pneg %p657_p2 }
 0x4ac   : > { %p663_p3 = pnand %p661_p11, %p658_p13 }
 0x4ae   : > { %666 = shalt.err (!%p663_p3)
}
 0x4af   : > { %s721_s22 = smov [#allocation11]  }
 0x4b0   : > { %521 = dma.smem_to_hbm (%p537_p5), %s721_s22, 16, %s944_s3, [#allocation12]  }
 0x4b1   : > { %692 = dma.done.wait (%p537_p5), [#allocation7], 16  }
 0x4b2   : > { %694 = vsyncadd (%p537_p5), [#allocation7], 4294967280 }
 0x4b3   : > { %696 = dma.done.wait (%p537_p5), [#allocation12], 16  }
 0x4b4   : > { %698 = vsyncadd (%p537_p5), [#allocation12], 4294967280 }
 0x4b5   : > { %414 = sfence }
 0x4b6 PF: > { %p17_p7 = scmp.ge.s32.totalorder %s781_s21, 4   ;;  %s960_s12 = smov %s705_s13 }
 0x4b7   : > { %s961_s13 = smov %s709_s14  ;;  %s962_s14 = smov %s817_s9 }
 0x4b8   : > { %s963_s15 = smov %s781_s21  ;;  %19 = sbr.rel (!%p17_p7) target bundleno = 6 (0x6), region = 88 }
 0x4bf   :  { %420 = vsyncpa [#allocation6], 1 }
 0x4c0   :  { %422 = vsyncpa [#allocation6 + $0x1], 1 }
 0x4c1   :  { %423 = vsyncpa [#allocation9], 1 }
 0x4c2   :  { %425 = vsyncpa [#allocation9 + $0x1], 1 }
 0x4c3   :  { %426 = vsyncpa [#allocation7], 1 }
 0x4c4   :  { %428 = vsyncpa [#allocation7 + $0x1], 1 }
 0x4c5   :  { %429 = vsyncpa [#allocation12], 1 }

</bundles_post_ra>
